<compile_context>
chip_gen: v7x
topology: tpu7x:2x2x1
jax: 0.10.0
libtpu: 0.0.40
codegen_flags: <defaults>
</compile_context>

<pallas_src>
import functools

import jax
import jax.numpy as jnp
from jax.experimental import pallas as pl
from jax.experimental.pallas import tpu as pltpu


def rnn_model_kernel(x2d_ref, wi_ref, b_ref, wh_ref, wfc_ref, bfc_ref, out_ref,
                     *, batch, seq_len):
    """RNNModel forward.

    x2d_ref : (T*B, D)  input, time-major and flattened (row t*B+b = x[b, t, :])
    wi_ref  : (D, H)    W_ih transposed vs. torch Linear layout
    b_ref   : (1, H)    b_ih + b_hh (pre-summed, loop-invariant)
    wh_ref  : (H, H)    W_hh transposed
    wfc_ref : (H, O)    fc weight transposed
    bfc_ref : (1, O)    fc bias
    out_ref : (B, O)    fc(h_{T-1})
    """
    B, T = batch, seq_len

    wh = wh_ref[...]

    # One big matmul for the whole input projection + folded biases.
    xw = (jnp.dot(x2d_ref[...], wi_ref[...], preferred_element_type=jnp.float32)
          + b_ref[...])                                   # (T*B, H)

    # Step 0: h_{-1} == 0, so skip the recurrent matmul entirely.
    h = jnp.tanh(xw[0:B, :])

    # Serial recurrence: only the unavoidable h @ W_hh per step.
    for t in range(1, T):
        xt = xw[t * B:(t + 1) * B, :]                     # static slice
        h = jnp.tanh(xt + jnp.dot(h, wh, preferred_element_type=jnp.float32))

    # Final fc on the last hidden state (this is the only module output).
    out = jnp.dot(h, wfc_ref[...], preferred_element_type=jnp.float32) + bfc_ref[...]
    out_ref[...] = out.astype(out_ref.dtype)


def rnn_model_forward(x, w_ih, b_ih, w_hh, b_hh, w_fc, b_fc):
    B, T, D = x.shape
    H = w_hh.shape[0]
    O = w_fc.shape[1]

    # Time-major, lane/sublane-dense slab so the kernel does one input matmul.
    x2d = jnp.transpose(x, (1, 0, 2)).reshape(T * B, D)
    # Loop-invariant bias fold (done once, outside the kernel's serial loop).
    b = (b_ih + b_hh).reshape(1, H)

    vmem = pl.BlockSpec(memory_space=pltpu.MemorySpace.VMEM)
    kernel = functools.partial(rnn_model_kernel, batch=B, seq_len=T)
    return pl.pallas_call(
        kernel,
        out_shape=jax.ShapeDtypeStruct((B, O), jnp.float32),
        in_specs=[vmem, vmem, vmem, vmem, vmem, vmem],  # everything is tiny -> VMEM
        out_specs=vmem,
    )(x2d, w_ih, b, w_hh, w_fc, b_fc)


def rnn_model_reference(x, w_ih, b_ih, w_hh, b_hh, w_fc, b_fc):
    """Pure-JAX mirror of RNNModel.forward (nn.RNN tanh, layerNum=1, + fc)."""
    B, T, D = x.shape
    H = w_hh.shape[0]
    h = jnp.zeros((B, H), jnp.float32)
    for t in range(T):
        h = jnp.tanh(x[:, t, :] @ w_ih + b_ih + h @ w_hh + b_hh)
    return h @ w_fc + b_fc


if __name__ == "__main__":
    # Module hyperparameters (small, consistent with the forward).
    inputDim, hiddenNum, outputDim, layerNum = 4, 32, 1, 1
    B, T = 2, 8  # batch, sequence length

    key = jax.random.PRNGKey(0)
    kx, k1, k2, k3, k4, k5, k6 = jax.random.split(key, 7)

    x = jax.random.normal(kx, (B, T, inputDim), dtype=jnp.float32)

    # Deterministic parameter init mirroring torch's uniform(-1/sqrt(fan_in), ...).
    # Torch stores Linear/RNN weights as (out, in); we keep the (in, out)
    # transpose so the kernel does row_vectors @ W directly.
    s_i = 1.0 / jnp.sqrt(inputDim)
    s_h = 1.0 / jnp.sqrt(hiddenNum)
    w_ih = jax.random.uniform(k1, (inputDim, hiddenNum), jnp.float32, -s_i, s_i)
    b_ih = jax.random.uniform(k2, (1, hiddenNum), jnp.float32, -s_h, s_h)
    w_hh = jax.random.uniform(k3, (hiddenNum, hiddenNum), jnp.float32, -s_h, s_h)
    b_hh = jax.random.uniform(k4, (1, hiddenNum), jnp.float32, -s_h, s_h)
    w_fc = jax.random.uniform(k5, (hiddenNum, outputDim), jnp.float32, -s_h, s_h)
    b_fc = jax.random.uniform(k6, (1, outputDim), jnp.float32, -s_h, s_h)

    out = rnn_model_forward(x, w_ih, b_ih, w_hh, b_hh, w_fc, b_fc)
    out = jax.block_until_ready(out)

    ref = rnn_model_reference(x, w_ih, b_ih, w_hh, b_hh, w_fc, b_fc)
    assert out.shape == (B, outputDim)
    assert jnp.allclose(out, ref, atol=1e-5, rtol=1e-5), "mismatch vs reference"

    print("KERNEL_OK")
</pallas_src>

<mosaic_0001>
module attributes {stable_mosaic.version = 11 : i64} {
  func.func @rnn_model_kernel(%arg0: memref<16x4xf32, #tpu.memory_space<vmem>>, %arg1: memref<4x32xf32, #tpu.memory_space<vmem>>, %arg2: memref<1x32xf32, #tpu.memory_space<vmem>>, %arg3: memref<32x32xf32, #tpu.memory_space<vmem>>, %arg4: memref<32x1xf32, #tpu.memory_space<vmem>>, %arg5: memref<1x1xf32, #tpu.memory_space<vmem>>, %arg6: memref<2x1xf32, #tpu.memory_space<vmem>>) attributes {dimension_semantics = [], scalar_prefetch = 0 : i64, scratch_operands = 0 : i64, tpu.core_type = #tpu.core_type<tc>} {
    %c0 = arith.constant 0 : index
    %c0_0 = arith.constant 0 : index
    %0 = vector.load %arg3[%c0, %c0_0] : memref<32x32xf32, #tpu.memory_space<vmem>>, vector<32x32xf32>
    %c0_1 = arith.constant 0 : index
    %c0_2 = arith.constant 0 : index
    %1 = vector.load %arg0[%c0_1, %c0_2] : memref<16x4xf32, #tpu.memory_space<vmem>>, vector<16x4xf32>
    %c0_3 = arith.constant 0 : index
    %c0_4 = arith.constant 0 : index
    %2 = vector.load %arg1[%c0_3, %c0_4] : memref<4x32xf32, #tpu.memory_space<vmem>>, vector<4x32xf32>
    %cst = arith.constant dense<0.000000e+00> : vector<16x32xf32>
    %3 = tpu.matmul %1, %2, %cst {dimension_numbers = #tpu.dot_dimension_numbers<[1], [0], [0], [1], [0, 0, 1, 1], [], []>} : vector<16x4xf32>, vector<4x32xf32>, vector<16x32xf32> -> vector<16x32xf32>
    %c0_5 = arith.constant 0 : index
    %c0_6 = arith.constant 0 : index
    %4 = vector.load %arg2[%c0_5, %c0_6] : memref<1x32xf32, #tpu.memory_space<vmem>>, vector<1x32xf32>
    %5 = vector.broadcast %4 : vector<1x32xf32> to vector<16x32xf32>
    %6 = arith.addf %3, %5 : vector<16x32xf32>
    %7 = vector.extract_strided_slice %6 {offsets = [0, 0], sizes = [2, 32], strides = [1, 1]} : vector<16x32xf32> to vector<2x32xf32>
    %8 = math.tanh %7 : vector<2x32xf32>
    %9 = vector.extract_strided_slice %6 {offsets = [2, 0], sizes = [2, 32], strides = [1, 1]} : vector<16x32xf32> to vector<2x32xf32>
    %cst_7 = arith.constant dense<0.000000e+00> : vector<2x32xf32>
    %10 = tpu.matmul %8, %0, %cst_7 {dimension_numbers = #tpu.dot_dimension_numbers<[1], [0], [0], [1], [0, 0, 1, 1], [], []>} : vector<2x32xf32>, vector<32x32xf32>, vector<2x32xf32> -> vector<2x32xf32>
    %11 = arith.addf %9, %10 : vector<2x32xf32>
    %12 = math.tanh %11 : vector<2x32xf32>
    %13 = vector.extract_strided_slice %6 {offsets = [4, 0], sizes = [2, 32], strides = [1, 1]} : vector<16x32xf32> to vector<2x32xf32>
    %cst_8 = arith.constant dense<0.000000e+00> : vector<2x32xf32>
    %14 = tpu.matmul %12, %0, %cst_8 {dimension_numbers = #tpu.dot_dimension_numbers<[1], [0], [0], [1], [0, 0, 1, 1], [], []>} : vector<2x32xf32>, vector<32x32xf32>, vector<2x32xf32> -> vector<2x32xf32>
    %15 = arith.addf %13, %14 : vector<2x32xf32>
    %16 = math.tanh %15 : vector<2x32xf32>
    %17 = vector.extract_strided_slice %6 {offsets = [6, 0], sizes = [2, 32], strides = [1, 1]} : vector<16x32xf32> to vector<2x32xf32>
    %cst_9 = arith.constant dense<0.000000e+00> : vector<2x32xf32>
    %18 = tpu.matmul %16, %0, %cst_9 {dimension_numbers = #tpu.dot_dimension_numbers<[1], [0], [0], [1], [0, 0, 1, 1], [], []>} : vector<2x32xf32>, vector<32x32xf32>, vector<2x32xf32> -> vector<2x32xf32>
    %19 = arith.addf %17, %18 : vector<2x32xf32>
    %20 = math.tanh %19 : vector<2x32xf32>
    %21 = vector.extract_strided_slice %6 {offsets = [8, 0], sizes = [2, 32], strides = [1, 1]} : vector<16x32xf32> to vector<2x32xf32>
    %cst_10 = arith.constant dense<0.000000e+00> : vector<2x32xf32>
    %22 = tpu.matmul %20, %0, %cst_10 {dimension_numbers = #tpu.dot_dimension_numbers<[1], [0], [0], [1], [0, 0, 1, 1], [], []>} : vector<2x32xf32>, vector<32x32xf32>, vector<2x32xf32> -> vector<2x32xf32>
    %23 = arith.addf %21, %22 : vector<2x32xf32>
    %24 = math.tanh %23 : vector<2x32xf32>
    %25 = vector.extract_strided_slice %6 {offsets = [10, 0], sizes = [2, 32], strides = [1, 1]} : vector<16x32xf32> to vector<2x32xf32>
    %cst_11 = arith.constant dense<0.000000e+00> : vector<2x32xf32>
    %26 = tpu.matmul %24, %0, %cst_11 {dimension_numbers = #tpu.dot_dimension_numbers<[1], [0], [0], [1], [0, 0, 1, 1], [], []>} : vector<2x32xf32>, vector<32x32xf32>, vector<2x32xf32> -> vector<2x32xf32>
    %27 = arith.addf %25, %26 : vector<2x32xf32>
    %28 = math.tanh %27 : vector<2x32xf32>
    %29 = vector.extract_strided_slice %6 {offsets = [12, 0], sizes = [2, 32], strides = [1, 1]} : vector<16x32xf32> to vector<2x32xf32>
    %cst_12 = arith.constant dense<0.000000e+00> : vector<2x32xf32>
    %30 = tpu.matmul %28, %0, %cst_12 {dimension_numbers = #tpu.dot_dimension_numbers<[1], [0], [0], [1], [0, 0, 1, 1], [], []>} : vector<2x32xf32>, vector<32x32xf32>, vector<2x32xf32> -> vector<2x32xf32>
    %31 = arith.addf %29, %30 : vector<2x32xf32>
    %32 = math.tanh %31 : vector<2x32xf32>
    %33 = vector.extract_strided_slice %6 {offsets = [14, 0], sizes = [2, 32], strides = [1, 1]} : vector<16x32xf32> to vector<2x32xf32>
    %cst_13 = arith.constant dense<0.000000e+00> : vector<2x32xf32>
    %34 = tpu.matmul %32, %0, %cst_13 {dimension_numbers = #tpu.dot_dimension_numbers<[1], [0], [0], [1], [0, 0, 1, 1], [], []>} : vector<2x32xf32>, vector<32x32xf32>, vector<2x32xf32> -> vector<2x32xf32>
    %35 = arith.addf %33, %34 : vector<2x32xf32>
    %36 = math.tanh %35 : vector<2x32xf32>
    %c0_14 = arith.constant 0 : index
    %c0_15 = arith.constant 0 : index
    %37 = vector.load %arg4[%c0_14, %c0_15] : memref<32x1xf32, #tpu.memory_space<vmem>>, vector<32x1xf32>
    %cst_16 = arith.constant dense<0.000000e+00> : vector<2x1xf32>
    %38 = tpu.matmul %36, %37, %cst_16 {dimension_numbers = #tpu.dot_dimension_numbers<[1], [0], [0], [1], [0, 0, 1, 1], [], []>} : vector<2x32xf32>, vector<32x1xf32>, vector<2x1xf32> -> vector<2x1xf32>
    %c0_17 = arith.constant 0 : index
    %c0_18 = arith.constant 0 : index
    %39 = vector.load %arg5[%c0_17, %c0_18] : memref<1x1xf32, #tpu.memory_space<vmem>>, vector<1x1xf32>
    %40 = vector.broadcast %39 : vector<1x1xf32> to vector<2x1xf32>
    %41 = arith.addf %38, %40 : vector<2x1xf32>
    %c0_19 = arith.constant 0 : index
    %c0_20 = arith.constant 0 : index
    %42 = vector.load %arg6[%c0_19, %c0_20] : memref<2x1xf32, #tpu.memory_space<vmem>>, vector<2x1xf32>
    tpu.vector_store %arg6[%c0_19, %c0_20], %41 {strides = array<i32>} : memref<2x1xf32, #tpu.memory_space<vmem>>, vector<2x1xf32>,
    return
  }
}

</mosaic_0001>

<bundles_post_ra>
// kernel: tpu_custom_call.1
= control target key start
LH: loop header
LB: loop body
LE: loop exit
PB: predicated region body
PF: predicated region fallthrough
CT: control target
= control target key end

     0   :  { %vm46_vm0 = vcmask 1043456   ;;  %vm39_vm1 = vcmask 31744   ;;  %v982_v3 = vmov 0.0|0.0   ;;  %vm983_vm2 = vmmov 0   ;;  %s1126_s1 = inlined_call_operand.vmem [shape: f32[4,32], index: 1, kind: input, shape index: {}]   ;;  %s1127_s0 = inlined_call_operand.vmem [shape: f32[16,4], index: 0, kind: input, shape index: {}]   ;;  %s1128_s3 = inlined_call_operand.vmem [shape: f32[32,32], index: 3, kind: input, shape index: {}]   ;;  %s1129_s2 = inlined_call_operand.vmem [shape: f32[1,32], index: 2, kind: input, shape index: {}]   ;;  %s1130_s4 = inlined_call_operand.vmem [shape: f32[32,1], index: 4, kind: input, shape index: {}]   ;;  %s1131_s5 = inlined_call_operand.<no memory space> [shape: f32[1,1], index: 5, kind: input, shape index: {}]   ;;  %s1132_s6 = inlined_call_operand.vmem [shape: f32[2,1], index: 6, kind: output, shape index: {}]  }
   0x1   :  { %v31_v0 = vld [vmem:[%s1126_s1] sm:$0xf]  ;;  %v30_v2 = vld [vmem:[%s1127_s0 + $0x8] sm:$0xff]  ;;  %915 = vmatprep.subr.bf16.mxu1 %v982_v3  ;;  %v27_v6 = vld [vmem:[%s1128_s3 + $0x10] sm:$0xff]  ;;  %v984_v7 = vmov 0.0   ;;  %vm126_vm3 = vcmask 261120   ;;  %v11_v57 = vstv %s1131_s5 }
   0x2   :  { %v29_v1 = vld [vmem:[%s1127_s0] sm:$0xff]  ;;  %822 = vmatprep.subr.msk.mxu0 %vm46_vm0, %v31_v0  ;;  %v26_v5 = vld [vmem:[%s1128_s3 + $0x8] sm:$0xff]  ;;  %835 = vmatprep.mubr.msk.f32.mxu1 %vm983_vm2, %v984_v7  ;;  %v28_v9 = vld [vmem:[%s1128_s3 + $0x18] sm:$0xff]  ;;  %12 = vst [vmem:[#allocation2] sm:$0x1] %v11_v57  ;;  %vm760_vm4 = vcmask 1024  }
   0x3   :  { %824 = vmatprep.mubr.msk.f32.mxu0 %vm39_vm1, %v29_v1  ;;  %823 = vmatpush3.msk.msra.mxu0 %vm46_vm0, %v31_v0  ;;  %v25_v4 = vld [vmem:[%s1128_s3] sm:$0xff]  ;;  %v1050_v10 = vpack.c.bf16 %v28_v9, %v27_v6  ;;  %v676_v52 = vld [vmem:[%s1130_s4 + $0x8] sm:$0xff]  ;;  %v677_v54 = vld [vmem:[%s1130_s4 + $0x10] sm:$0xff] }
   0x4   :  { %825 = vmatmul.mubr.msk.f32.vlgmr.msra.gmra.mrb[0].mxu0 %vm39_vm1, %v30_v2  ;;  %v1041_v8 = vpack.c.bf16 %v26_v5, %v25_v4  ;;  %921 = vmatprep.subr.bf16.mxu0 %v982_v3  ;;  %v766_v11 = vld [vmem:[%s1129_s2] ss:$0 sm:$0xff]  ;;  %v678_v55 = vld [vmem:[%s1130_s4 + $0x18] sm:$0xff] }
   0x5   :  { %846 = vmatprep.mubr.msk.f32.mxu0 %vm983_vm2, %v984_v7  ;;  %v675_v51 = vld [vmem:[%s1130_s4] sm:$0xff]  ;;  %v961_v56 = vpack.c.bf16 %v678_v55, %v677_v54 }
   0x6   :  { %917 = vmatpush3.bf16.msra.mxu1 %v1041_v8  ;;  %923 = vmatpush3.bf16.msra.mxu0 %v1041_v8  ;;  %v958_v53 = vpack.c.bf16 %v676_v52, %v675_v51 }
   0x7   :  { %918 = vmatprep.subr.bf16.mxu1 %v982_v3  ;;  %924 = vmatprep.subr.bf16.mxu0 %v982_v3 }
   0x9   :  { %v777_v0 = vld [vmem:[#allocation2] ss:$0 sm:$0xff] }
   0xa   :  { %920 = vmatpush3.bf16.msra.mxu1 %v1050_v10  ;;  %926 = vmatpush3.bf16.msra.mxu0 %v1050_v10 }
   0xb   :  { %927 = vmatprep.subr.bf16.mxu1 %v982_v3  ;;  %933 = vmatprep.subr.bf16.mxu0 %v982_v3 }
  0xd7   :  { %v826_v12 = vpop.f32.mrb[0].mxu0 }
  0xd8   :  { %v1062_v13 = vadd.f32 %v826_v12, %v766_v11  ;;  %v116_v14 = vpop.f32.mrb[1].mxu0 }
  0xd9   :  { %v117_v15 = vadd.f32 %v766_v11, %v116_v14 }
  0xdb   :  { %966 = vtanh.f32 %v117_v15 }
  0xe5   :  { %v967_v16 = vpop.eup %966 }
  0xe6   :  { %836 = vmatmul.mubr.msk.f32.vlgmr.msra.gmra.mrb[0].mxu1 %vm126_vm3, %v967_v16 }
  0xe7   :  { %929 = vmatpush3.bf16.msra.mxu1 %v1041_v8  ;;  %857 = vmatprep.mubr.msk.f32.mxu1 %vm983_vm2, %v984_v7 }
  0xe8   :  { %930 = vmatprep.subr.bf16.mxu1 %v982_v3 }
  0xeb   :  { %932 = vmatpush3.bf16.msra.mxu1 %v1050_v10 }
  0xec   :  { %939 = vmatprep.subr.bf16.mxu1 %v982_v3 }
 0x1b9   :  { %v196_v17 = vpop.f32.mrb[0].mxu1 }
 0x1ba   :  { %v201_v18 = vrot.slane %v196_v17, 6  ;;  %v837_v19 = vpop.f32.mrb[1].mxu1 }
 0x1bc   :  { %v203_v20 = vadd.f32 %v201_v18, %v117_v15 }
 0x1be   :  { %968 = vtanh.f32 %v203_v20 }
 0x1c8   :  { %v969_v21 = vpop.eup %968 }
 0x1c9   :  { %v206_v22 = vrot.slane %v969_v21, 2 }
 0x1cb   :  { %847 = vmatmul.mubr.msk.f32.vlgmr.msra.gmra.mrb[2].mxu0 %vm126_vm3, %v206_v22 }
 0x1cc   :  { %935 = vmatpush3.bf16.msra.mxu0 %v1041_v8  ;;  %868 = vmatprep.mubr.msk.f32.mxu0 %vm983_vm2, %v984_v7 }
 0x1cd   :  { %936 = vmatprep.subr.bf16.mxu0 %v982_v3 }
 0x1d0   :  { %938 = vmatpush3.bf16.msra.mxu0 %v1050_v10 }
 0x1d1   :  { %945 = vmatprep.subr.bf16.mxu0 %v982_v3 }
 0x29e   :  { %v275_v23 = vpop.f32.mrb[2].mxu0 }
 0x29f   :  { %v280_v24 = vrot.slane %v275_v23, 4  ;;  %v848_v25 = vpop.f32.mrb[3].mxu0 }
 0x2a1   :  { %v282_v26 = vadd.f32 %v280_v24, %v117_v15 }
 0x2a3   :  { %970 = vtanh.f32 %v282_v26 }
 0x2ad   :  { %v971_v27 = vpop.eup %970 }
 0x2ae   :  { %v285_v28 = vrot.slane %v971_v27, 4 }
 0x2b0   :  { %858 = vmatmul.mubr.msk.f32.vlgmr.msra.gmra.mrb[2].mxu1 %vm126_vm3, %v285_v28 }
 0x2b1   :  { %941 = vmatpush3.bf16.msra.mxu1 %v1041_v8  ;;  %879 = vmatprep.mubr.msk.f32.mxu1 %vm983_vm2, %v984_v7 }
 0x2b2   :  { %942 = vmatprep.subr.bf16.mxu1 %v982_v3 }
 0x2b5   :  { %944 = vmatpush3.bf16.msra.mxu1 %v1050_v10 }
 0x2b6   :  { %951 = vmatprep.subr.bf16.mxu1 %v982_v3 }
 0x383   :  { %v354_v29 = vpop.f32.mrb[2].mxu1 }
 0x384   :  { %v359_v30 = vrot.slane %v354_v29, 2  ;;  %v859_v31 = vpop.f32.mrb[3].mxu1 }
 0x386   :  { %v361_v32 = vadd.f32 %v359_v30, %v117_v15 }
 0x388   :  { %972 = vtanh.f32 %v361_v32 }
 0x392   :  { %v973_v33 = vpop.eup %972 }
 0x393   :  { %v364_v34 = vrot.slane %v973_v33, 6 }
 0x395   :  { %869 = vmatmul.mubr.msk.f32.vlgmr.msra.gmra.mrb[4].mxu0 %vm126_vm3, %v364_v34 }
 0x396   :  { %947 = vmatpush3.bf16.msra.mxu0 %v1041_v8  ;;  %890 = vmatprep.mubr.msk.f32.mxu0 %vm983_vm2, %v984_v7 }
 0x397   :  { %948 = vmatprep.subr.bf16.mxu0 %v982_v3 }
 0x39a   :  { %950 = vmatpush3.bf16.msra.mxu0 %v1050_v10 }
 0x39b   :  { %957 = vmatprep.subr.bf16.mxu0 %v982_v3 }
 0x468   :  { %v433_v35 = vpop.f32.mrb[4].mxu0 }
 0x469   :  { %v437_v36 = vadd.f32 %v433_v35, %v1062_v13  ;;  %v870_v37 = vpop.f32.mrb[5].mxu0 }
 0x46b   :  { %974 = vtanh.f32 %v437_v36 }
 0x475   :  { %v975_v38 = vpop.eup %974 }
 0x476   :  { %880 = vmatmul.mubr.msk.f32.vlgmr.msra.gmra.mrb[4].mxu1 %vm126_vm3, %v975_v38 }
 0x477   :  { %953 = vmatpush3.bf16.msra.mxu1 %v1041_v8  ;;  %901 = vmatprep.mubr.msk.f32.mxu1 %vm983_vm2, %v984_v7 }
 0x478   :  { %954 = vmatprep.subr.bf16.mxu1 %v982_v3 }
 0x47b   :  { %956 = vmatpush3.bf16.msra.mxu1 %v1050_v10 }
 0x549   :  { %v508_v39 = vpop.f32.mrb[4].mxu1 }
 0x54a   :  { %v513_v40 = vrot.slane %v508_v39, 6  ;;  %v881_v41 = vpop.f32.mrb[5].mxu1 }
 0x54c   :  { %v515_v42 = vadd.f32 %v513_v40, %v1062_v13 }
 0x54e   :  { %976 = vtanh.f32 %v515_v42 }
 0x558   :  { %v977_v43 = vpop.eup %976 }
 0x559   :  { %v518_v44 = vrot.slane %v977_v43, 2 }
 0x55b   :  { %891 = vmatmul.mubr.msk.f32.vlgmr.msra.gmra.mrb[6].mxu0 %vm126_vm3, %v518_v44 }
 0x55c   :  { %912 = vmatprep.mubr.msk.f32.mxu0 %vm983_vm2, %v984_v7  ;;  %959 = vmatpush3.bf16.msra.mxu0 %v958_v53 }
 0x55d   :  { %960 = vmatprep.subr.bf16.mxu0 %v982_v3 }
 0x560   :  { %962 = vmatpush3.bf16.msra.mxu0 %v961_v56 }
 0x62e   :  { %v587_v45 = vpop.f32.mrb[6].mxu0 }
 0x62f   :  { %v592_v46 = vrot.slane %v587_v45, 4  ;;  %v892_v47 = vpop.f32.mrb[7].mxu0 }
 0x631   :  { %v594_v48 = vadd.f32 %v592_v46, %v1062_v13 }
 0x633   :  { %978 = vtanh.f32 %v594_v48 }
 0x63d   :  { %v979_v49 = vpop.eup %978 }
 0x63e   :  { %v597_v50 = vrot.slane %v979_v49, 4 }
 0x640   :  { %902 = vmatmul.mubr.msk.f32.vlgmr.msra.gmra.mrb[6].mxu1 %vm126_vm3, %v597_v50 }
 0x713   :  { %v666_v58 = vpop.f32.mrb[6].mxu1 }
 0x714   :  { %v671_v59 = vrot.slane %v666_v58, 2  ;;  %v903_v60 = vpop.f32.mrb[7].mxu1 }
 0x716   :  { %v673_v61 = vadd.f32 %v671_v59, %v1062_v13 }
 0x718   :  { %980 = vtanh.f32 %v673_v61 }
 0x722   :  { %v981_v62 = vpop.eup %980 }
 0x723   :  { %v687_v63 = vrot.slane %v981_v62, 6 }
 0x725   :  { %913 = vmatmul.mubr.msk.f32.vlgmr.msra.gmra.mrb[8].mxu0 %vm126_vm3, %v687_v63 }
 0x7f8   :  { %v756_v1 = vpop.f32.mrb[8].mxu0 }
 0x7f9   :  { %v757_v2 = vadd.f32 %v777_v0, %v756_v1  ;;  %v914_v3 = vpop.f32.mrb[9].mxu0 }
 0x7fb   :  { %761 = vst.msk [vmem:[%s1132_s6] sm:$0x3] %vm760_vm4, %v757_v2 }

</bundles_post_ra>
